<compile_context>
chip_gen: v6e
topology: v6e:2x2x1
jax: 0.10.0
libtpu: 0.0.40
codegen_flags: <defaults>
</compile_context>

<pallas_src>
import jax
import jax.numpy as jnp
from jax.experimental import pallas as pl
from jax.experimental.pallas import tpu as pltpu


def _mlp_kernel(x_ref, w1_ref, b1_ref, w2_ref, b2_ref, o_ref):
    # Hidden layer: MXU matmul with f32 accumulation, bias add (VPU) + tanh (EUP).
    h = jnp.dot(x_ref[...], w1_ref[...], preferred_element_type=jnp.float32)
    h = jnp.tanh(h + b1_ref[...])
    # Output layer: cast activations to the weight dtype (no-op in f32 mode),
    # accumulate in f32, add bias, store directly at the real output width.
    y = jnp.dot(h.astype(w2_ref.dtype), w2_ref[...],
                preferred_element_type=jnp.float32)
    o_ref[...] = (y + b2_ref[...]).astype(o_ref.dtype)


def _round_up(n, m):
    return ((n + m - 1) // m) * m


def _pick_batch_tile(B, row_multiple, bytes_per_row, vmem_budget):
    """Batch tile selection.

    * B <= 256: one full-extent block, single grid step (overhead-bound regime).
    * B  > 256: >= 2 grid steps so the 'parallel' batch axis can be sharded
      across v7x's two TensorCores, with tiles up to ~4096 rows to amortize the
      per-step fixed cost; shrink if the double-buffered tile would blow VMEM.
    """
    if B <= 256:
        return B
    steps = max(2, pl.cdiv(B, 4096))
    tile = _round_up(pl.cdiv(B, steps), row_multiple)
    tile = min(tile, _round_up(4096, row_multiple))
    while tile > row_multiple and 2 * tile * bytes_per_row > vmem_budget:
        tile = max(row_multiple, _round_up(tile // 2, row_multiple))
    return tile


def prepare_params(w1, b1, w2, b2, mxu_dtype=None):
    """One-time parameter prep (hoisted out of the per-call path).

    Optionally casts the weight matrices to the MXU input dtype (e.g. bf16);
    biases stay f32 so the bias add + tanh run in f32.
    """
    if mxu_dtype is not None:
        w1 = w1.astype(mxu_dtype)
        w2 = w2.astype(mxu_dtype)
    return w1, b1, w2, b2


def net_forward(x, w1, b1, w2, b2, *, batch_tile=None):
    """x: [B, F]; w1: [F, H]; b1: [1, H]; w2: [H, O]; b2: [1, O] -> [B, O]."""
    B, F = x.shape
    H = w1.shape[1]
    O = w2.shape[1]
    out_dtype = x.dtype

    # bf16 (or narrower) inputs pack 16 rows per sublane group -> 16-row tiles.
    narrow = (jnp.dtype(x.dtype).itemsize < 4) or (jnp.dtype(w1.dtype).itemsize < 4)
    row_multiple = 16 if narrow else 8

    bytes_per_row = (F * jnp.dtype(x.dtype).itemsize
                     + O * jnp.dtype(out_dtype).itemsize)
    weight_bytes = (w1.size * jnp.dtype(w1.dtype).itemsize
                    + w2.size * jnp.dtype(w2.dtype).itemsize
                    + b1.size * jnp.dtype(b1.dtype).itemsize
                    + b2.size * jnp.dtype(b2.dtype).itemsize)
    vmem_budget = (40 << 20) - 2 * weight_bytes  # headroom for resident weights

    if batch_tile is None:
        batch_tile = _pick_batch_tile(B, row_multiple, bytes_per_row, vmem_budget)

    # Non-divisible B: pad rows up to a tile multiple (zeros; sliced off below)
    # instead of collapsing to a single grid step.
    Bp = _round_up(B, batch_tile)
    x_in = x if Bp == B else jnp.pad(x, ((0, Bp - B), (0, 0)))
    grid = (Bp // batch_tile,)

    # ---- cost estimate (unpadded logical work) ----
    cost = pl.CostEstimate(
        flops=2 * B * (F * H + H * O),
        transcendentals=B * H,
        bytes_accessed=(x.size * jnp.dtype(x.dtype).itemsize
                        + weight_bytes
                        + B * O * jnp.dtype(out_dtype).itemsize),
    )

    # ---- VMEM budget: double-buffered x/out tiles + double-buffered weights ----
    vmem_est = 2 * (batch_tile * bytes_per_row + weight_bytes)
    compiler_kwargs = dict(dimension_semantics=("parallel",))
    # v5e's scoped default is 16 MiB -> raise whenever the footprint is close;
    # cap at 48 MiB so v7x (64 MiB physical) keeps compiler scratch headroom.
    if vmem_est > (12 << 20):
        compiler_kwargs["vmem_limit_bytes"] = min(vmem_est + (8 << 20), 48 << 20)

    out = pl.pallas_call(
        _mlp_kernel,
        out_shape=jax.ShapeDtypeStruct((Bp, O), out_dtype),
        grid_spec=pltpu.PrefetchScalarGridSpec(
            num_scalar_prefetch=0,
            grid=grid,
            in_specs=[
                pl.BlockSpec((batch_tile, F), lambda i: (i, 0)),  # x tile
                pl.BlockSpec((F, H), lambda i: (0, 0)),           # W1 (resident)
                pl.BlockSpec((1, H), lambda i: (0, 0)),           # b1
                pl.BlockSpec((H, O), lambda i: (0, 0)),           # W2 (resident)
                pl.BlockSpec((1, O), lambda i: (0, 0)),           # b2
            ],
            out_specs=pl.BlockSpec((batch_tile, O), lambda i: (i, 0)),
        ),
        compiler_params=pltpu.CompilerParams(**compiler_kwargs),
        cost_estimate=cost,
    )(x_in, w1, b1, w2, b2)

    return out if Bp == B else out[:B]


def init_params(key, n_feature, n_hidden, n_output, dtype=jnp.float32):
    """Deterministic init mimicking torch.nn.Linear (uniform +/- 1/sqrt(fan_in))."""
    k1, k2, k3, k4 = jax.random.split(key, 4)
    bound1 = 1.0 / jnp.sqrt(n_feature)
    bound2 = 1.0 / jnp.sqrt(n_hidden)
    # stored as [in, out] (transposed vs. PyTorch's [out, in])
    w1 = jax.random.uniform(k1, (n_feature, n_hidden), dtype, -bound1, bound1)
    b1 = jax.random.uniform(k2, (1, n_hidden), dtype, -bound1, bound1)
    w2 = jax.random.uniform(k3, (n_hidden, n_output), dtype, -bound2, bound2)
    b2 = jax.random.uniform(k4, (1, n_output), dtype, -bound2, bound2)
    return w1, b1, w2, b2


if __name__ == "__main__":
    # small shapes consistent with the module: batch=8, n_feature=16,
    # n_hidden=32, n_output=8
    B, F, H, O = 8, 16, 32, 8

    key = jax.random.PRNGKey(0)
    kx, kp, kx2 = jax.random.split(key, 3)
    x = jax.random.normal(kx, (B, F), dtype=jnp.float32)
    w1, b1, w2, b2 = init_params(kp, F, H, O)

    # pure-JAX reference
    ref = jnp.tanh(x @ w1 + b1) @ w2 + b2

    # f32 path (single-step, full-extent blocks) -- exact vs. reference
    out = jax.block_until_ready(net_forward(x, w1, b1, w2, b2))
    assert out.shape == (B, O)
    assert jnp.allclose(out, ref, atol=1e-5, rtol=1e-5), "f32 mismatch vs reference"

    # bf16 path: x + weights bf16 (halved HBM streams, MXU-friendly), f32 accumulation
    w1b, b1b, w2b, b2b = prepare_params(w1, b1, w2, b2, mxu_dtype=jnp.bfloat16)
    out_bf16 = jax.block_until_ready(
        net_forward(x.astype(jnp.bfloat16), w1b, b1b, w2b, b2b))
    assert out_bf16.shape == (B, O)
    assert jnp.allclose(out_bf16.astype(jnp.float32), ref, atol=3e-2, rtol=3e-2), \
        "bf16 mismatch vs reference"

    # larger, non-divisible batch: exercises multi-step grid + row padding path
    B2 = 300
    x2 = jax.random.normal(kx2, (B2, F), dtype=jnp.float32)
    ref2 = jnp.tanh(x2 @ w1 + b1) @ w2 + b2
    out2 = jax.block_until_ready(net_forward(x2, w1, b1, w2, b2))
    assert out2.shape == (B2, O)
    assert jnp.allclose(out2, ref2, atol=1e-5, rtol=1e-5), "tiled-path mismatch vs reference"

    print("KERNEL_OK")
</pallas_src>

<mosaic_0001>
module attributes {stable_mosaic.version = 11 : i64} {
  func.func @_mlp_kernel(%arg0: i32, %arg1: memref<8x16xf32, #tpu.memory_space<vmem>>, %arg2: memref<16x32xf32, #tpu.memory_space<vmem>>, %arg3: memref<1x32xf32, #tpu.memory_space<vmem>>, %arg4: memref<32x8xf32, #tpu.memory_space<vmem>>, %arg5: memref<1x8xf32, #tpu.memory_space<vmem>>, %arg6: memref<8x8xf32, #tpu.memory_space<vmem>>) attributes {dimension_semantics = [#tpu.dimension_semantics<parallel>], iteration_bounds = array<i64: 1>, scalar_prefetch = 0 : i64, scratch_operands = 0 : i64, tpu.core_type = #tpu.core_type<tc>, window_params = [{transform_indices = @transform_0, window_bounds = array<i64: 8, 16>}, {pipeline_mode = #tpu.pipeline_mode<synchronous>, transform_indices = @transform_1, window_bounds = array<i64: 16, 32>}, {pipeline_mode = #tpu.pipeline_mode<synchronous>, transform_indices = @transform_2, window_bounds = array<i64: 1, 32>}, {pipeline_mode = #tpu.pipeline_mode<synchronous>, transform_indices = @transform_3, window_bounds = array<i64: 32, 8>}, {pipeline_mode = #tpu.pipeline_mode<synchronous>, transform_indices = @transform_4, window_bounds = array<i64: 1, 8>}, {transform_indices = @transform_5, window_bounds = array<i64: 8, 8>}]} {
    %c0 = arith.constant 0 : index
    %c0_0 = arith.constant 0 : index
    %0 = vector.load %arg1[%c0, %c0_0] : memref<8x16xf32, #tpu.memory_space<vmem>>, vector<8x16xf32>
    %c0_1 = arith.constant 0 : index
    %c0_2 = arith.constant 0 : index
    %1 = vector.load %arg2[%c0_1, %c0_2] : memref<16x32xf32, #tpu.memory_space<vmem>>, vector<16x32xf32>
    %cst = arith.constant dense<0.000000e+00> : vector<8x32xf32>
    %2 = tpu.matmul %0, %1, %cst {dimension_numbers = #tpu.dot_dimension_numbers<[1], [0], [0], [1], [0, 0, 1, 1], [], []>} : vector<8x16xf32>, vector<16x32xf32>, vector<8x32xf32> -> vector<8x32xf32>
    %c0_3 = arith.constant 0 : index
    %c0_4 = arith.constant 0 : index
    %3 = vector.load %arg3[%c0_3, %c0_4] : memref<1x32xf32, #tpu.memory_space<vmem>>, vector<1x32xf32>
    %4 = vector.broadcast %3 : vector<1x32xf32> to vector<8x32xf32>
    %5 = arith.addf %2, %4 : vector<8x32xf32>
    %6 = math.tanh %5 : vector<8x32xf32>
    %c0_5 = arith.constant 0 : index
    %c0_6 = arith.constant 0 : index
    %7 = vector.load %arg4[%c0_5, %c0_6] : memref<32x8xf32, #tpu.memory_space<vmem>>, vector<32x8xf32>
    %cst_7 = arith.constant dense<0.000000e+00> : vector<8x8xf32>
    %8 = tpu.matmul %6, %7, %cst_7 {dimension_numbers = #tpu.dot_dimension_numbers<[1], [0], [0], [1], [0, 0, 1, 1], [], []>} : vector<8x32xf32>, vector<32x8xf32>, vector<8x8xf32> -> vector<8x8xf32>
    %c0_8 = arith.constant 0 : index
    %c0_9 = arith.constant 0 : index
    %9 = vector.load %arg5[%c0_8, %c0_9] : memref<1x8xf32, #tpu.memory_space<vmem>>, vector<1x8xf32>
    %10 = vector.broadcast %9 : vector<1x8xf32> to vector<8x8xf32>
    %11 = arith.addf %8, %10 : vector<8x8xf32>
    %c0_10 = arith.constant 0 : index
    %c0_11 = arith.constant 0 : index
    %12 = vector.load %arg6[%c0_10, %c0_11] : memref<8x8xf32, #tpu.memory_space<vmem>>, vector<8x8xf32>
    tpu.vector_store %arg6[%c0_10, %c0_11], %11 {strides = array<i32>} : memref<8x8xf32, #tpu.memory_space<vmem>>, vector<8x8xf32>,
    return
  }
  func.func @transform_0(%arg0: i32) -> (i32, i32) {
    %c0_i32 = arith.constant 0 : i32
    %c0_i32_0 = arith.constant 0 : i32
    return %arg0, %c0_i32 : i32, i32
  }
  func.func @transform_1(%arg0: i32) -> (i32, i32) {
    %c0_i32 = arith.constant 0 : i32
    %c0_i32_0 = arith.constant 0 : i32
    %c0_i32_1 = arith.constant 0 : i32
    return %c0_i32, %c0_i32_0 : i32, i32
  }
  func.func @transform_2(%arg0: i32) -> (i32, i32) {
    %c0_i32 = arith.constant 0 : i32
    %c0_i32_0 = arith.constant 0 : i32
    %c0_i32_1 = arith.constant 0 : i32
    return %c0_i32, %c0_i32_0 : i32, i32
  }
  func.func @transform_3(%arg0: i32) -> (i32, i32) {
    %c0_i32 = arith.constant 0 : i32
    %c0_i32_0 = arith.constant 0 : i32
    %c0_i32_1 = arith.constant 0 : i32
    return %c0_i32, %c0_i32_0 : i32, i32
  }
  func.func @transform_4(%arg0: i32) -> (i32, i32) {
    %c0_i32 = arith.constant 0 : i32
    %c0_i32_0 = arith.constant 0 : i32
    %c0_i32_1 = arith.constant 0 : i32
    return %c0_i32, %c0_i32_0 : i32, i32
  }
  func.func @transform_5(%arg0: i32) -> (i32, i32) {
    %c0_i32 = arith.constant 0 : i32
    %c0_i32_0 = arith.constant 0 : i32
    return %arg0, %c0_i32 : i32, i32
  }
}

</mosaic_0001>

<bundles_post_ra>
// kernel: tpu_custom_call.1
= control target key start
LH: loop header
LB: loop body
LE: loop exit
PB: predicated region body
PF: predicated region fallthrough
CT: control target
= control target key end

     0   :  { %v264_v1 = vmov 0.0   ;;  %vm265_vm0 = vmmov 0   ;;  %s327_s0 = inlined_call_operand.vmem [shape: f32[8,16], index: 0, kind: input, shape index: {}]   ;;  %s328_s1 = inlined_call_operand.vmem [shape: f32[16,32], index: 1, kind: input, shape index: {}]   ;;  %s329_s2 = inlined_call_operand.vmem [shape: f32[1,32], index: 2, kind: input, shape index: {}]   ;;  %s330_s3 = inlined_call_operand.vmem [shape: f32[32,8], index: 3, kind: input, shape index: {}]   ;;  %s331_s4 = inlined_call_operand.vmem [shape: f32[1,8], index: 4, kind: input, shape index: {}]   ;;  %s332_s5 = inlined_call_operand.hbm [shape: f32[8,8], index: 5, kind: output, shape index: {}]  }
   0x1   :  { %v23_v0 = vld [vmem:[%s328_s1 + $0x8] sm:$0xff]  ;;  %219 = vmatprep.subr.mxu0 %v264_v1  ;;  %v22_v2 = vld [vmem:[%s328_s1] sm:$0xff]  ;;  %223 = vmatprep.mubr.msk.f32.mxu0 %vm265_vm0, %v264_v1 }
   0x2   :  { %10 = vsyncpa [#allocation3], 0  ;;  %220 = vmatpush3.msra.mxu0 %v23_v0  ;;  %v21_v3 = vld [vmem:[%s327_s0] sm:$0xff]  ;;  %vm31_vm1 = vcmask 130048   ;;  %226 = vmatprep.subr.mxu1 %v264_v1  ;;  %v109_v4 = vld [vmem:[%s330_s3 + $0x18] sm:$0xff]  ;;  %vm117_vm2 = vcmask 261120  }
   0x3   :  { %221 = vmatprep.subr.mxu0 %v264_v1  ;;  %234 = vmatprep.mubr.msk.f32.mxu1 %vm265_vm0, %v264_v1  ;;  %v108_v5 = vld [vmem:[%s330_s3 + $0x10] sm:$0xff]  ;;  %v107_v6 = vld [vmem:[%s330_s3 + $0x8] sm:$0xff]  ;;  %v106_v7 = vld [vmem:[%s330_s3] sm:$0xff]  ;;  %s266_s9 = smov [#allocation2]   ;;  %vm191_vm3 = vcmask 64512  }
   0x4   :  { %222 = vmatpush3.msra.mxu0 %v22_v2  ;;  %227 = vmatpush3.msra.mxu1 %v109_v4  ;;  %v207_v8 = vld [vmem:[%s329_s2] ss:$0 sm:$0xff]  ;;  %s199_s3 = sshll.u32 %s266_s9, 4  ;;  %s200_s3 = int_to_ptr.vmem [resolvable:$true] %s199_s3 }
   0x5   :  { %224 = vmatmul.mubr.msk.f32.vlgmr.msra.gmra.mxu0 %vm31_vm1, %v21_v3  ;;  %228 = vmatprep.subr.mxu1 %v264_v1  ;;  %v209_v13 = vld [vmem:[%s331_s4] ss:$0 sm:$0xff]  ;;  %s242_s2 = scalar_lea.vmem %s200_s3, 128  ;;  %p247_p1 = scmp.lt.s32.totalorder %s200_s3, %s200_s3 }
   0x6   :  { %229 = vmatpush3.msra.mxu1 %v108_v5  ;;  %p243_p0 = scmp.ne.s32.totalorder %s200_s3, %s242_s2  ;;  %p248_p2 = scmp.lt.s32.totalorder %s242_s2, %s242_s2 }
   0x7   :  { %230 = vmatprep.subr.mxu1 %v264_v1 }
   0x8   :  { %231 = vmatpush3.msra.mxu1 %v107_v6  ;;  %p249_p3 = por %p248_p2, %p247_p1 }
   0x9   :  { %232 = vmatprep.subr.mxu1 %v264_v1 }
   0xa   :  { %233 = vmatpush3.msra.mxu1 %v106_v7  ;;  %p250_p4 = pnand %p249_p3, %p243_p0 }
  0xc5   :  { %v101_v9 = vpop.f32.mrf.mxu0 }
  0xc6   :  { %v102_v10 = vadd.f32 %v207_v8, %v101_v9 }
  0xc7   :  { %v225_v11 = vpop.f32.mrf.mxu0 }
  0xc8   :  { %240 = vtanh.f32 %v102_v10 }
  0xd5   :  { %v241_v12 = vpop.eup %240 }
  0xd6   :  { %235 = vmatmul.mubr.msk.f32.vlgmr.msra.gmra.mxu1 %vm117_vm2, %v241_v12 }
 0x196   :  { %v187_v14 = vpop.f32.mrf.mxu1 }
 0x197   :  { %v188_v15 = vadd.f32 %v209_v13, %v187_v14 }
 0x198   :  { %v236_v16 = vpop.f32.mrf.mxu1 }
 0x199   :  { %192 = vst.msk [vmem:[#allocation2] sm:$0xff] %vm191_vm3, %v188_v15 }
 0x19a   :  { %253 = shalt.err (!%p250_p4)
}
 0x19b   :  { %202 = dma.vmem_to_hbm [thread:$0]  %s200_s3, 128, %s332_s5, [#allocation3]  }
 0x19c   :  { %262 = dma.done.wait [#allocation3], 128  }
 0x19d   :  { %263 = vsyncadd [#allocation3], 4294967168 }
 0x19e   :  { %206 = vsyncpa [#allocation3], 1 }

</bundles_post_ra>
